<compile_context>
chip_gen: v5e
topology: v5e:2x2
jax: 0.10.0
libtpu: 0.0.40
codegen_flags: <defaults>
</compile_context>

<pallas_src>
import functools
import math

import jax
import jax.numpy as jnp
from jax.experimental import pallas as pl
from jax.experimental.pallas import tpu as pltpu

EPS = 1e-8
LOG_2PI = math.log(2.0 * math.pi)

HID_PAD = 128   # hidden width padded to the 128-lane vreg width
OUT_PAD = 128   # output slab width: lanes [0, A) = action, lane A = log_prob


def _round_up(x, m):
    return (x + m - 1) // m * m


def policy_gaussian_kernel(num_outputs,
                           state_ref, eps_ref,
                           w1_ref, b1_ref, w2_ref, b2_ref,
                           wh_ref, bh_ref,
                           out_ref):
    x = state_ref[...]                       # bf16 [TILE_B, num_inputs]
    eps = eps_ref[...]                       # f32  [TILE_B, OUT_PAD] (zero in padded lanes)

    # Trunk: Linear -> ReLU -> Linear -> ReLU  (bf16 MXU inputs, f32 accumulation)
    h1 = jnp.dot(x, w1_ref[...], preferred_element_type=jnp.float32) + b1_ref[...]
    h1 = jnp.maximum(h1, 0.0)
    h2 = jnp.dot(h1.astype(jnp.bfloat16), w2_ref[...],
                 preferred_element_type=jnp.float32) + b2_ref[...]
    h2 = jnp.maximum(h2, 0.0)
    h2b = h2.astype(jnp.bfloat16)

    # Fused head: one [HID_PAD, 2*OUT_PAD] matmul; mu / logstd are 128-lane-aligned slices.
    head = jnp.dot(h2b, wh_ref[...], preferred_element_type=jnp.float32) + bh_ref[...]
    mu = head[:, :OUT_PAD]
    logstd = head[:, OUT_PAD:]
    std = jnp.exp(logstd) + EPS

    # Reparameterized sample: ac = mu + std * eps.
    # Since z = (ac - mu)/std == eps exactly, log_prob uses eps directly (no sub/div).
    ac = mu + std * eps

    lane = jax.lax.broadcasted_iota(jnp.int32, ac.shape, 1)
    valid = lane < num_outputs

    # Independent(Normal(mu, std), 1).log_prob(ac):
    #   sum_lanes[-0.5*eps^2 - log(std)] - 0.5*A*log(2*pi)
    # eps is zero in padded lanes, so only -log(std) needs masking; the constant is hoisted.
    logp_terms = -0.5 * (eps * eps) + jnp.where(valid, -jnp.log(std), 0.0)
    logp = (jnp.sum(logp_terms, axis=-1, keepdims=True)
            - 0.5 * LOG_2PI * num_outputs)                    # [TILE_B, 1]

    # Lane-dense output slab: ac in lanes [0, A), log_prob broadcast into lane A, rest 0.
    out_ref[...] = (jnp.where(valid, ac, 0.0)
                    + jnp.where(lane == num_outputs, logp, 0.0))


def pack_params(params, num_outputs):
    """Zero-pad / split the logical params into lane-aligned blocks (done once, off the hot path)."""
    w1, b1, w2, b2, w3, b3 = params
    num_inputs = w1.shape[0]

    def pad2(a, rows, cols):
        return jnp.pad(a, ((0, rows - a.shape[0]), (0, cols - a.shape[1])))

    w1_p = pad2(w1, num_inputs, HID_PAD).astype(jnp.bfloat16)
    b1_p = pad2(b1, 1, HID_PAD).astype(jnp.float32)
    w2_p = pad2(w2, HID_PAD, HID_PAD).astype(jnp.bfloat16)
    b2_p = pad2(b2, 1, HID_PAD).astype(jnp.float32)
    # Fused head: mu columns in lanes [0, OUT_PAD), logstd columns in lanes [OUT_PAD, 2*OUT_PAD).
    w_mu = pad2(w3[:, :num_outputs], HID_PAD, OUT_PAD)
    w_ls = pad2(w3[:, num_outputs:], HID_PAD, OUT_PAD)
    b_mu = pad2(b3[:, :num_outputs], 1, OUT_PAD)
    b_ls = pad2(b3[:, num_outputs:], 1, OUT_PAD)
    w_head = jnp.concatenate([w_mu, w_ls], axis=1).astype(jnp.bfloat16)   # [HID_PAD, 2*OUT_PAD]
    b_head = jnp.concatenate([b_mu, b_ls], axis=1).astype(jnp.float32)    # [1, 2*OUT_PAD]
    return (w1_p, b1_p, w2_p, b2_p, w_head, b_head)


@functools.partial(jax.jit, static_argnames=("num_outputs", "tile_b"))
def policy_gaussian_forward(state, eps, packed_params, *, num_outputs, tile_b=256):
    """state: [B, num_inputs] f32, eps: [B, num_outputs] f32 standard normal."""
    B, num_inputs = state.shape
    tile = min(tile_b, _round_up(B, 8))       # sublane-aligned batch tile
    b_pad = _round_up(B, tile)

    state_p = jnp.pad(state, ((0, b_pad - B), (0, 0))).astype(jnp.bfloat16)
    eps_p = jnp.pad(eps.astype(jnp.float32),
                    ((0, b_pad - B), (0, OUT_PAD - eps.shape[1])))

    w1_p, b1_p, w2_p, b2_p, w_head, b_head = packed_params

    def batch_spec(shape):
        return pl.BlockSpec(shape, lambda i: (i, 0))

    def const_spec(arr):
        return pl.BlockSpec(arr.shape, lambda i: (0, 0))   # weights stay VMEM-resident

    out = pl.pallas_call(
        functools.partial(policy_gaussian_kernel, num_outputs),
        out_shape=jax.ShapeDtypeStruct((b_pad, OUT_PAD), jnp.float32),
        grid=(b_pad // tile,),
        in_specs=[
            batch_spec((tile, num_inputs)),
            batch_spec((tile, OUT_PAD)),
            const_spec(w1_p), const_spec(b1_p),
            const_spec(w2_p), const_spec(b2_p),
            const_spec(w_head), const_spec(b_head),
        ],
        out_specs=batch_spec((tile, OUT_PAD)),
        compiler_params=pltpu.CompilerParams(
            dimension_semantics=("parallel",)),
    )(state_p, eps_p, w1_p, b1_p, w2_p, b2_p, w_head, b_head)

    ac = out[:B, :num_outputs]
    logp = out[:B, num_outputs]
    return ac, logp


def init_params(key, num_inputs, num_outputs, hidden_dim=65, hidden_depth=2):
    """Deterministic PyTorch-Linear-style init (uniform +/- 1/sqrt(fan_in))."""
    assert hidden_depth == 2
    dims = [(num_inputs, hidden_dim), (hidden_dim, hidden_dim),
            (hidden_dim, num_outputs * 2)]
    params = []
    for (fan_in, fan_out) in dims:
        key, kw, kb = jax.random.split(key, 3)
        bound = 1.0 / math.sqrt(fan_in)
        w = jax.random.uniform(kw, (fan_in, fan_out), jnp.float32, -bound, bound)
        b = jax.random.uniform(kb, (1, fan_out), jnp.float32, -bound, bound)
        params += [w, b]
    return params


def reference_forward(state, params, eps, num_outputs):
    """Pure-JAX f32 reference with the original (unpadded) semantics."""
    w1, b1, w2, b2, w3, b3 = params
    h1 = jnp.maximum(state @ w1 + b1, 0.0)
    h2 = jnp.maximum(h1 @ w2 + b2, 0.0)
    out = h2 @ w3 + b3
    mu, logstd = out[:, :num_outputs], out[:, num_outputs:]
    std = jnp.exp(logstd) + EPS
    ac = mu + std * eps
    logp = jnp.sum(-0.5 * eps * eps - jnp.log(std) - 0.5 * LOG_2PI, axis=-1)
    return ac, logp


if __name__ == "__main__":
    key = jax.random.PRNGKey(0)
    B, num_inputs, num_outputs = 8, 32, 6

    k_state, k_eps, k_params = jax.random.split(key, 3)
    state = jax.random.normal(k_state, (B, num_inputs), jnp.float32)
    eps = jax.random.normal(k_eps, (B, num_outputs), jnp.float32)
    params = init_params(k_params, num_inputs, num_outputs)
    packed = pack_params(params, num_outputs)

    ac, logp = policy_gaussian_forward(state, eps, packed, num_outputs=num_outputs)
    jax.block_until_ready((ac, logp))

    ac_ref, logp_ref = reference_forward(state, params, eps, num_outputs)

    assert ac.shape == (B, num_outputs)
    assert logp.shape == (B,)
    assert bool(jnp.all(jnp.isfinite(ac))) and bool(jnp.all(jnp.isfinite(logp)))
    # bf16 matmul inputs -> loose tolerance vs the f32 reference
    assert bool(jnp.allclose(ac, ac_ref, atol=0.1, rtol=0.05))
    assert bool(jnp.allclose(logp, logp_ref, atol=0.2, rtol=0.05))
    print("KERNEL_OK")
</pallas_src>

<mosaic_0001>
module attributes {stable_mosaic.version = 11 : i64} {
  func.func @policy_gaussian_kernel(%arg0: i32, %arg1: memref<8x32xbf16, #tpu.memory_space<vmem>>, %arg2: memref<8x128xf32, #tpu.memory_space<vmem>>, %arg3: memref<32x128xbf16, #tpu.memory_space<vmem>>, %arg4: memref<1x128xf32, #tpu.memory_space<vmem>>, %arg5: memref<128x128xbf16, #tpu.memory_space<vmem>>, %arg6: memref<1x128xf32, #tpu.memory_space<vmem>>, %arg7: memref<128x256xbf16, #tpu.memory_space<vmem>>, %arg8: memref<1x256xf32, #tpu.memory_space<vmem>>, %arg9: memref<8x128xf32, #tpu.memory_space<vmem>>) attributes {dimension_semantics = [#tpu.dimension_semantics<parallel>], iteration_bounds = array<i64: 1>, scalar_prefetch = 0 : i64, scratch_operands = 0 : i64, tpu.core_type = #tpu.core_type<tc>, window_params = [{transform_indices = @transform_0, window_bounds = array<i64: 8, 32>}, {transform_indices = @transform_1, window_bounds = array<i64: 8, 128>}, {pipeline_mode = #tpu.pipeline_mode<synchronous>, transform_indices = @transform_2, window_bounds = array<i64: 32, 128>}, {pipeline_mode = #tpu.pipeline_mode<synchronous>, transform_indices = @transform_3, window_bounds = array<i64: 1, 128>}, {pipeline_mode = #tpu.pipeline_mode<synchronous>, transform_indices = @transform_4, window_bounds = array<i64: 128, 128>}, {pipeline_mode = #tpu.pipeline_mode<synchronous>, transform_indices = @transform_5, window_bounds = array<i64: 1, 128>}, {pipeline_mode = #tpu.pipeline_mode<synchronous>, transform_indices = @transform_6, window_bounds = array<i64: 128, 256>}, {pipeline_mode = #tpu.pipeline_mode<synchronous>, transform_indices = @transform_7, window_bounds = array<i64: 1, 256>}, {transform_indices = @transform_8, window_bounds = array<i64: 8, 128>}]} {
    %c0 = arith.constant 0 : index
    %c0_0 = arith.constant 0 : index
    %0 = vector.load %arg1[%c0, %c0_0] : memref<8x32xbf16, #tpu.memory_space<vmem>>, vector<8x32xbf16>
    %c0_1 = arith.constant 0 : index
    %c0_2 = arith.constant 0 : index
    %1 = vector.load %arg2[%c0_1, %c0_2] : memref<8x128xf32, #tpu.memory_space<vmem>>, vector<8x128xf32>
    %c0_3 = arith.constant 0 : index
    %c0_4 = arith.constant 0 : index
    %2 = vector.load %arg3[%c0_3, %c0_4] : memref<32x128xbf16, #tpu.memory_space<vmem>>, vector<32x128xbf16>
    %cst = arith.constant dense<0.000000e+00> : vector<8x128xf32>
    %3 = tpu.matmul %0, %2, %cst {dimension_numbers = #tpu.dot_dimension_numbers<[1], [0], [0], [1], [0, 0, 1, 1], [], []>} : vector<8x32xbf16>, vector<32x128xbf16>, vector<8x128xf32> -> vector<8x128xf32>
    %c0_5 = arith.constant 0 : index
    %c0_6 = arith.constant 0 : index
    %4 = vector.load %arg4[%c0_5, %c0_6] : memref<1x128xf32, #tpu.memory_space<vmem>>, vector<1x128xf32>
    %5 = vector.broadcast %4 : vector<1x128xf32> to vector<8x128xf32>
    %6 = arith.addf %3, %5 : vector<8x128xf32>
    %cst_7 = arith.constant 0.000000e+00 : f32
    %7 = vector.broadcast %cst_7 : f32 to vector<8x128xf32>
    %8 = arith.maximumf %6, %7 : vector<8x128xf32>
    %9 = arith.truncf %8 : vector<8x128xf32> to vector<8x128xbf16>
    %c0_8 = arith.constant 0 : index
    %c0_9 = arith.constant 0 : index
    %10 = vector.load %arg5[%c0_8, %c0_9] : memref<128x128xbf16, #tpu.memory_space<vmem>>, vector<128x128xbf16>
    %cst_10 = arith.constant dense<0.000000e+00> : vector<8x128xf32>
    %11 = tpu.matmul %9, %10, %cst_10 {dimension_numbers = #tpu.dot_dimension_numbers<[1], [0], [0], [1], [0, 0, 1, 1], [], []>} : vector<8x128xbf16>, vector<128x128xbf16>, vector<8x128xf32> -> vector<8x128xf32>
    %c0_11 = arith.constant 0 : index
    %c0_12 = arith.constant 0 : index
    %12 = vector.load %arg6[%c0_11, %c0_12] : memref<1x128xf32, #tpu.memory_space<vmem>>, vector<1x128xf32>
    %13 = vector.broadcast %12 : vector<1x128xf32> to vector<8x128xf32>
    %14 = arith.addf %11, %13 : vector<8x128xf32>
    %cst_13 = arith.constant 0.000000e+00 : f32
    %15 = vector.broadcast %cst_13 : f32 to vector<8x128xf32>
    %16 = arith.maximumf %14, %15 : vector<8x128xf32>
    %17 = arith.truncf %16 : vector<8x128xf32> to vector<8x128xbf16>
    %c0_14 = arith.constant 0 : index
    %c0_15 = arith.constant 0 : index
    %18 = vector.load %arg7[%c0_14, %c0_15] : memref<128x256xbf16, #tpu.memory_space<vmem>>, vector<128x256xbf16>
    %cst_16 = arith.constant dense<0.000000e+00> : vector<8x256xf32>
    %19 = tpu.matmul %17, %18, %cst_16 {dimension_numbers = #tpu.dot_dimension_numbers<[1], [0], [0], [1], [0, 0, 1, 1], [], []>} : vector<8x128xbf16>, vector<128x256xbf16>, vector<8x256xf32> -> vector<8x256xf32>
    %c0_17 = arith.constant 0 : index
    %c0_18 = arith.constant 0 : index
    %20 = vector.load %arg8[%c0_17, %c0_18] : memref<1x256xf32, #tpu.memory_space<vmem>>, vector<1x256xf32>
    %21 = vector.broadcast %20 : vector<1x256xf32> to vector<8x256xf32>
    %22 = arith.addf %19, %21 : vector<8x256xf32>
    %23 = vector.extract_strided_slice %22 {offsets = [0, 0], sizes = [8, 128], strides = [1, 1]} : vector<8x256xf32> to vector<8x128xf32>
    %24 = vector.extract_strided_slice %22 {offsets = [0, 128], sizes = [8, 128], strides = [1, 1]} : vector<8x256xf32> to vector<8x128xf32>
    %25 = math.exp %24 : vector<8x128xf32>
    %cst_19 = arith.constant 9.99999993E-9 : f32
    %26 = vector.broadcast %cst_19 : f32 to vector<8x128xf32>
    %27 = arith.addf %25, %26 : vector<8x128xf32>
    %28 = arith.mulf %27, %1 : vector<8x128xf32>
    %29 = arith.addf %23, %28 : vector<8x128xf32>
    %30 = tpu.iota {dimensions = array<i32: 1>} : vector<8x128xi32>
    %c6_i32 = arith.constant 6 : i32
    %31 = vector.broadcast %c6_i32 : i32 to vector<8x128xi32>
    %32 = arith.cmpi slt, %30, %31 : vector<8x128xi32>
    %33 = arith.mulf %1, %1 : vector<8x128xf32>
    %cst_20 = arith.constant -5.000000e-01 : f32
    %34 = vector.broadcast %cst_20 : f32 to vector<8x128xf32>
    %35 = arith.mulf %34, %33 : vector<8x128xf32>
    %36 = math.log %27 : vector<8x128xf32>
    %cst_21 = arith.constant 0.000000e+00 : f32
    %37 = vector.broadcast %cst_21 : f32 to vector<8x128xf32>
    %38 = arith.subf %37, %36 : vector<8x128xf32>
    %cst_22 = arith.constant 0.000000e+00 : f32
    %39 = vector.broadcast %cst_22 : f32 to vector<8x128xf32>
    %40 = arith.select %32, %38, %39 : vector<8x128xi1>, vector<8x128xf32>
    %41 = arith.addf %35, %40 : vector<8x128xf32>
    %cst_23 = arith.constant dense<0.000000e+00> : vector<8xf32>
    %42 = vector.multi_reduction <add>, %41, %cst_23 [1] : vector<8x128xf32> to vector<8xf32>
    %43 = vector.shape_cast %42 : vector<8xf32> to vector<8x1xf32>
    %cst_24 = arith.constant 5.51363134 : f32
    %44 = vector.broadcast %cst_24 : f32 to vector<8x1xf32>
    %45 = arith.subf %43, %44 : vector<8x1xf32>
    %cst_25 = arith.constant 0.000000e+00 : f32
    %46 = vector.broadcast %cst_25 : f32 to vector<8x128xf32>
    %47 = arith.select %32, %29, %46 : vector<8x128xi1>, vector<8x128xf32>
    %c6_i32_26 = arith.constant 6 : i32
    %48 = vector.broadcast %c6_i32_26 : i32 to vector<8x128xi32>
    %49 = arith.cmpi eq, %30, %48 : vector<8x128xi32>
    %cst_27 = arith.constant 0.000000e+00 : f32
    %50 = vector.shape_cast %45 : vector<8x1xf32> to vector<8x1xf32>
    %51 = vector.broadcast %50 : vector<8x1xf32> to vector<8x128xf32>
    %52 = vector.broadcast %cst_27 : f32 to vector<8x128xf32>
    %53 = arith.select %49, %51, %52 : vector<8x128xi1>, vector<8x128xf32>
    %54 = arith.addf %47, %53 : vector<8x128xf32>
    %c0_28 = arith.constant 0 : index
    %c0_29 = arith.constant 0 : index
    %55 = vector.load %arg9[%c0_28, %c0_29] : memref<8x128xf32, #tpu.memory_space<vmem>>, vector<8x128xf32>
    tpu.vector_store %arg9[%c0_28, %c0_29], %54 {strides = array<i32>} : memref<8x128xf32, #tpu.memory_space<vmem>>, vector<8x128xf32>,
    return
  }
  func.func @transform_0(%arg0: i32) -> (i32, i32) {
    %c0_i32 = arith.constant 0 : i32
    %c0_i32_0 = arith.constant 0 : i32
    return %arg0, %c0_i32 : i32, i32
  }
  func.func @transform_1(%arg0: i32) -> (i32, i32) {
    %c0_i32 = arith.constant 0 : i32
    %c0_i32_0 = arith.constant 0 : i32
    return %arg0, %c0_i32 : i32, i32
  }
  func.func @transform_2(%arg0: i32) -> (i32, i32) {
    %c0_i32 = arith.constant 0 : i32
    %c0_i32_0 = arith.constant 0 : i32
    %c0_i32_1 = arith.constant 0 : i32
    return %c0_i32, %c0_i32_0 : i32, i32
  }
  func.func @transform_3(%arg0: i32) -> (i32, i32) {
    %c0_i32 = arith.constant 0 : i32
    %c0_i32_0 = arith.constant 0 : i32
    %c0_i32_1 = arith.constant 0 : i32
    return %c0_i32, %c0_i32_0 : i32, i32
  }
  func.func @transform_4(%arg0: i32) -> (i32, i32) {
    %c0_i32 = arith.constant 0 : i32
    %c0_i32_0 = arith.constant 0 : i32
    %c0_i32_1 = arith.constant 0 : i32
    return %c0_i32, %c0_i32_0 : i32, i32
  }
  func.func @transform_5(%arg0: i32) -> (i32, i32) {
    %c0_i32 = arith.constant 0 : i32
    %c0_i32_0 = arith.constant 0 : i32
    %c0_i32_1 = arith.constant 0 : i32
    return %c0_i32, %c0_i32_0 : i32, i32
  }
  func.func @transform_6(%arg0: i32) -> (i32, i32) {
    %c0_i32 = arith.constant 0 : i32
    %c0_i32_0 = arith.constant 0 : i32
    %c0_i32_1 = arith.constant 0 : i32
    return %c0_i32, %c0_i32_0 : i32, i32
  }
  func.func @transform_7(%arg0: i32) -> (i32, i32) {
    %c0_i32 = arith.constant 0 : i32
    %c0_i32_0 = arith.constant 0 : i32
    %c0_i32_1 = arith.constant 0 : i32
    return %c0_i32, %c0_i32_0 : i32, i32
  }
  func.func @transform_8(%arg0: i32) -> (i32, i32) {
    %c0_i32 = arith.constant 0 : i32
    %c0_i32_0 = arith.constant 0 : i32
    return %arg0, %c0_i32 : i32, i32
  }
}

</mosaic_0001>

<bundles_post_ra>
// kernel: policy_gaussian_forward.1
= control target key start
LH: loop header
LB: loop body
LE: loop exit
PB: predicated region body
PF: predicated region fallthrough
CT: control target
= control target key end

     0   :  { %13 = vsyncpa [#allocation3], 0  ;;  %s620_s0 = inlined_call_operand.vmem [shape: bf16[8,32], index: 0, kind: input, shape index: {}]   ;;  %s621_s1 = inlined_call_operand.vmem [shape: f32[8,128], index: 1, kind: input, shape index: {}]   ;;  %s622_s2 = inlined_call_operand.vmem [shape: bf16[32,128], index: 2, kind: input, shape index: {}]   ;;  %s623_s3 = inlined_call_operand.vmem [shape: f32[1,128], index: 3, kind: input, shape index: {}]   ;;  %s624_s4 = inlined_call_operand.hbm [shape: bf16[128,128], index: 4, kind: input, shape index: {}]   ;;  %s625_s5 = inlined_call_operand.vmem [shape: f32[1,128], index: 5, kind: input, shape index: {}]   ;;  %s626_s6 = inlined_call_operand.hbm [shape: bf16[128,256], index: 6, kind: input, shape index: {}]   ;;  %s627_s7 = inlined_call_operand.vmem [shape: f32[1,256], index: 7, kind: input, shape index: {}]   ;;  %s628_s8 = inlined_call_operand.vmem [shape: f32[8,128], index: 8, kind: output, shape index: {}]  }
   0x1   :  { %s27_s29 = sshll.u32 %s624_s4, 4  ;;  %s28_s29 = int_to_ptr.hbm [resolvable:$true] %s27_s29 }
   0x2   :  { %14 = vsyncpa [#allocation5], 0  ;;  %s539_s30 = smov [#allocation2]   ;;  %s42_s12 = sshll.u32 %s626_s6, 4  ;;  %s43_s12 = int_to_ptr.hbm [resolvable:$true] %s42_s12 }
   0x3   :  { %s29_s9 = sshll.u32 %s539_s30, 4  ;;  %s540_s13 = smov 64   ;;  %s30_s9 = int_to_ptr.vmem [resolvable:$true] %s29_s9 }
   0x4   :  { %s541_s14 = smov 4   ;;  %s542_s15 = smov [#allocation4]  }
   0x5   :  { %35 = dma.hbm_to_vmem [thread:$0]  %s28_s29, 1024, %s30_s9, [#allocation3], %s540_s13, %s540_s13, %s541_s14  }
   0x6   :  { %s44_s16 = sshll.u32 %s542_s15, 4  ;;  %s543_s17 = smov 128   ;;  %s45_s16 = int_to_ptr.vmem [resolvable:$true] %s44_s16 }
   0x7   :  { %s544_s18 = smov 8  }
   0x8   :  { %50 = dma.hbm_to_vmem [thread:$0]  %s43_s12, 2048, %s45_s16, [#allocation5], %s543_s17, %s543_s17, %s544_s18  }
   0x9   :  { %535 = dma.done.wait [#allocation3], 1024  }
   0xa   :  { %536 = vsyncadd [#allocation3], 4294966272 }
   0xb   :  { %537 = dma.done.wait [#allocation5], 2048  }
   0xc   :  { %538 = vsyncadd [#allocation5], 4294965248  ;;  %v450_v0 = vld [vmem:[%s622_s2 + $0x8] sm:$0xff]  ;;  %v458_v1 = vld [vmem:[#allocation2 + $0x38] sm:$0xff]  ;;  %vm84_vm0 = vcmask 261120  }
   0xd   :  { %94 = vmatpush.bf16.msra.mxu0 %v450_v0  ;;  %v449_v2 = vld [vmem:[%s622_s2] sm:$0xff]  ;;  %171 = vmatpush.bf16.msra.mxu1 %v458_v1  ;;  %v457_v3 = vld [vmem:[#allocation2 + $0x30] sm:$0xff]  ;;  %v456_v5 = vld [vmem:[#allocation2 + $0x28] sm:$0xff] }
   0xe   :  { %v62_v4 = vld [vmem:[%s620_s0] sm:$0xf]  ;;  %v454_v7 = vld [vmem:[#allocation2 + $0x18] sm:$0xff]  ;;  %v453_v8 = vld [vmem:[#allocation2 + $0x10] sm:$0xff] }
   0xf   :  { %v455_v6 = vld [vmem:[#allocation2 + $0x20] sm:$0xff]  ;;  %v452_v9 = vld [vmem:[#allocation2 + $0x8] sm:$0xff]  ;;  %v442_v11 = vld [vmem:[#allocation4 + $0x70] sm:$0xf] }
  0x10   :  { %v451_v10 = vld [vmem:[#allocation2] sm:$0xff]  ;;  %v474_v12 = vld [vmem:[#allocation4 + $0x74] sm:$0xf0]  ;;  %v473_v13 = vld [vmem:[#allocation4 + $0x74] sm:$0xf] }
  0x11   :  { %95 = vmatpush.bf16.msra.mxu0 %v449_v2  ;;  %172 = vmatpush.bf16.msra.mxu1 %v457_v3  ;;  %v443_v14 = vor.u32 %v474_v12, %v442_v11  ;;  %v444_v15 = vld [vmem:[#allocation4 + $0x78] sm:$0xf0]  ;;  %v434_v16 = vld [vmem:[#allocation4 + $0x60] sm:$0xf]  ;;  %v472_v17 = vld [vmem:[#allocation4 + $0x64] sm:$0xf0] }
  0x12   :  { %v447_v18 = vor.u32 %v473_v13, %v444_v15  ;;  %v471_v19 = vld [vmem:[#allocation4 + $0x64] sm:$0xf]  ;;  %v436_v20 = vld [vmem:[#allocation4 + $0x68] sm:$0xf0]  ;;  %v435_v21 = vor.u32 %v472_v17, %v434_v16  ;;  %v426_v23 = vld [vmem:[#allocation4 + $0x50] sm:$0xf]  ;;  %v319_v13 = vlaneseq }
  0x13   :  { %288 = vmatpush.bf16.msra.mxu2 %v443_v14  ;;  %v439_v22 = vor.u32 %v471_v19, %v436_v20  ;;  %v470_v24 = vld [vmem:[#allocation4 + $0x54] sm:$0xf0]  ;;  %v469_v25 = vld [vmem:[#allocation4 + $0x54] sm:$0xf]  ;;  %v428_v26 = vld [vmem:[#allocation4 + $0x58] sm:$0xf0] }
  0x14   :  { %351 = vmatmul.msk.bf16.vlgmr.msra.gmra.mxu0 %vm84_vm0, %v62_v4  ;;  %301 = vmatpush.bf16.msra.mxu3 %v447_v18  ;;  %v427_v27 = vor.u32 %v470_v24, %v426_v23  ;;  %v431_v28 = vor.u32 %v469_v25, %v428_v26  ;;  %v418_v29 = vld [vmem:[#allocation4 + $0x40] sm:$0xf]  ;;  %v468_v30 = vld [vmem:[#allocation4 + $0x44] sm:$0xf0]  ;;  %v467_v31 = vld [vmem:[#allocation4 + $0x44] sm:$0xf] }
  0x15   :  { %173 = vmatpush.bf16.msra.mxu1 %v456_v5  ;;  %v420_v32 = vld [vmem:[#allocation4 + $0x48] sm:$0xf0]  ;;  %v419_v33 = vor.u32 %v468_v30, %v418_v29  ;;  %v410_v35 = vld [vmem:[#allocation4 + $0x30] sm:$0xf]  ;;  %v466_v36 = vld [vmem:[#allocation4 + $0x34] sm:$0xf0] }
  0x16   :  { %v423_v34 = vor.u32 %v467_v31, %v420_v32  ;;  %v465_v37 = vld [vmem:[#allocation4 + $0x34] sm:$0xf]  ;;  %v412_v38 = vld [vmem:[#allocation4 + $0x38] sm:$0xf0]  ;;  %v411_v39 = vor.u32 %v466_v36, %v410_v35  ;;  %v402_v41 = vld [vmem:[#allocation4 + $0x20] sm:$0xf] }
  0x17   :  { %289 = vmatpush.bf16.msra.mxu2 %v435_v21  ;;  %v415_v40 = vor.u32 %v465_v37, %v412_v38  ;;  %v464_v42 = vld [vmem:[#allocation4 + $0x24] sm:$0xf0]  ;;  %v463_v43 = vld [vmem:[#allocation4 + $0x24] sm:$0xf]  ;;  %v404_v44 = vld [vmem:[#allocation4 + $0x28] sm:$0xf0] }
  0x18   :  { %302 = vmatpush.bf16.msra.mxu3 %v439_v22  ;;  %v403_v45 = vor.u32 %v464_v42, %v402_v41  ;;  %v407_v46 = vor.u32 %v463_v43, %v404_v44  ;;  %v481_v47 = vld [vmem:[%s623_s3] ss:$0 sm:$0xff]  ;;  %v394_v53 = vld [vmem:[#allocation4 + $0x10] sm:$0xf]  ;;  %v462_v54 = vld [vmem:[#allocation4 + $0x14] sm:$0xf0] }
  0x19   :  { %174 = vmatpush.bf16.msra.mxu1 %v455_v6  ;;  %v461_v55 = vld [vmem:[#allocation4 + $0x14] sm:$0xf]  ;;  %v395_v56 = vor.u32 %v462_v54, %v394_v53  ;;  %v396_v57 = vld [vmem:[#allocation4 + $0x18] sm:$0xf0]  ;;  %v386_v59 = vld [vmem:[#allocation4] sm:$0xf] }
  0x1a   :  { %v399_v58 = vor.u32 %v461_v55, %v396_v57  ;;  %v460_v60 = vld [vmem:[#allocation4 + $0x4] sm:$0xf0]  ;;  %v459_v61 = vld [vmem:[#allocation4 + $0x4] sm:$0xf]  ;;  %v388_v63 = vld [vmem:[#allocation4 + $0x8] sm:$0xf0] }
  0x1b   :  { %290 = vmatpush.bf16.msra.mxu2 %v427_v27  ;;  %v387_v62 = vor.u32 %v460_v60, %v386_v59  ;;  %v391_v0 = vor.u32 %v459_v61, %v388_v63  ;;  %v482_v1 = vld [vmem:[%s625_s5] ss:$0 sm:$0xff]  ;;  %v320_v19 = vand.u32 127, %v319_v13 }
  0x1c   :  { %303 = vmatpush.bf16.msra.mxu3 %v431_v28  ;;  %v63_v18 = vld [vmem:[%s621_s1] sm:$0xff] }
  0x1d   :  { %175 = vmatpush.bf16.msra.mxu1 %v454_v7  ;;  %v202_v7 = vld [vmem:[%s627_s7] sm:$0x3]  ;;  %vm321_vm1 = vcmp.lt.s32.totalorder %v320_v19, 6  ;;  %v322_v24 = vmul.f32 %v63_v18, %v63_v18  ;;  %vm333_vm2 = vcmp.eq.s32.totalorder %v320_v19, 6 }
  0x1e   :  { %v204_v16 = vperm.slane %v202_v7, 0 }
  0x1f   :  { %291 = vmatpush.bf16.msra.mxu2 %v419_v33  ;;  %v323_v28 = vmul.f32 -0.5, %v322_v24 }
  0x20   :  { %304 = vmatpush.bf16.msra.mxu3 %v423_v34 }
  0x21   :  { %176 = vmatpush.bf16.msra.mxu1 %v453_v8  ;;  %v205_v8 = vperm.slane %v202_v7, 1 }
  0x23   :  { %292 = vmatpush.bf16.msra.mxu2 %v411_v39 }
  0x24   :  { %305 = vmatpush.bf16.msra.mxu3 %v415_v40 }
  0x25   :  { %177 = vmatpush.bf16.msra.mxu1 %v452_v9 }
  0x27   :  { %293 = vmatpush.bf16.msra.mxu2 %v403_v45 }
  0x28   :  { %306 = vmatpush.bf16.msra.mxu3 %v407_v46 }
  0x29   :  { %178 = vmatpush.bf16.msra.mxu1 %v451_v10 }
  0x2b   :  { %294 = vmatpush.bf16.msra.mxu2 %v395_v56 }
  0x2c   :  { %307 = vmatpush.bf16.msra.mxu3 %v399_v58 }
  0x2f   :  { %295 = vmatpush.bf16.msra.mxu2 %v387_v62 }
  0x30   :  { %308 = vmatpush.bf16.msra.mxu3 %v391_v0 }
  0x91   :  { %v97_v48 = vpop.f32.mrf.mxu0 }
  0x92   :  { %v98_v49 = vadd.f32 %v481_v47, %v97_v48 }
  0x94   :  { %v101_v50 = vmax.f32 %v98_v49, 0.0 }
  0x96   :  { %v102_v51 = vpack.c.bf16 %v101_v50, %v101_v50 }
  0x98   :  { %179 = vmatmul.bf16.vlgmr.msra.gmra.mxu1 %v102_v51 }
  0x99   :  { %v99_v52 = vpop.f32.mrf.mxu0 }
 0x115   :  { %v180_v2 = vpop.f32.mrf.mxu1 }
 0x116   :  { %v181_v3 = vadd.f32 %v482_v1, %v180_v2 }
 0x118   :  { %v184_v4 = vmax.f32 %v181_v3, 0.0 }
 0x11a   :  { %v185_v5 = vpack.c.bf16 %v184_v4, %v184_v4 }
 0x11c   :  { %296 = vmatmul.bf16.vlgmr.msra.gmra.mxu2 %v185_v5  ;;  %309 = vmatmul.bf16.vlgmr.msra.gmra.mxu3 %v185_v5 }
 0x11d   :  { %v182_v6 = vpop.f32.mrf.mxu1 }
 0x19f   :  { %v297_v9 = vpop.f32.mrf.mxu2  ;;  %v310_v10 = vpop.f32.mrf.mxu3 }
 0x1a0   :  { %v311_v11 = vadd.f32 %v310_v10, %v205_v8  ;;  %v298_v21 = vadd.f32 %v297_v9, %v204_v16 }
 0x1a2   :  { %v314_v12 = vmul.f32 1.442695, %v311_v11 }
 0x1a4   :  { %483 = vpow2.f32 %v314_v12 }
 0x1a7   :  { %v299_v14 = vpop.f32.mrf.mxu2  ;;  %v312_v15 = vpop.f32.mrf.mxu3 }
 0x1aa   :  { %v484_v17 = vpop.eup %483 }
 0x1ab   :  { %v316_v20 = vadd.f32 1e-08, %v484_v17 }
 0x1ad   :  { %v317_v22 = vmul.f32 %v316_v20, %v63_v18  ;;  %485 = vlog2.f32 %v316_v20 }
 0x1af   :  { %v318_v23 = vadd.f32 %v317_v22, %v298_v21 }
 0x1b1   :  { %v332_v25 = vsel %vm321_vm1, %v318_v23, 0.0 }
 0x1b3   :  { %v486_v26 = vpop.eup %485 }
 0x1b4   :  { %v325_v27 = vmul.f32 0.6931472, %v486_v26 }
 0x1b6   :  { %v326_v29 = vsub.f32 0.0, %v325_v27 }
 0x1b8   :  { %v327_v30 = vsel %vm321_vm1, %v326_v29, 0.0 }
 0x1b9   :  { %v328_v31 = vadd.f32 %v327_v30, %v323_v28 }
 0x1bb   :  { %329 = vadd.xlane.f32.xlu0 %v328_v31 }
 0x22e   :  { %v330_v32 = vpop.xlane.xlu0 %329 }
 0x22f   :  { %v448_v33 = vadd.f32 -5.5136313, %v330_v32 }
 0x231   :  { %v334_v34 = vsel %vm333_vm2, %v448_v33, 0.0 }
 0x232   :  { %v335_v35 = vadd.f32 %v334_v34, %v332_v25 }
 0x234   :  { %336 = vst [vmem:[%s628_s8] sm:$0xff] %v335_v35 }
 0x235   :  { %341 = vsyncpa [#allocation3], 1 }
 0x236   :  { %342 = vsyncpa [#allocation5], 1 }

</bundles_post_ra>
